<compile_context>
chip_gen: v6e
topology: v6e:2x2x1
jax: 0.10.0
libtpu: 0.0.40
codegen_flags: <defaults>
</compile_context>

<pallas_src>
import functools

import jax
import jax.numpy as jnp
from jax import lax
from jax.experimental import pallas as pl
from jax.experimental.pallas import tpu as pltpu


_CHUNK_ROWS = 1024                 # in-kernel chunk: bounds f32 intermediates (~0.5 MiB each)
_TARGET_BLOCK_BYTES = 4 << 20      # per-input HBM bytes per grid step (overhead amortization)


def _filter_loss_kernel(pm_ref, noisy_ref, clean_ref, m_ref, out_ref,
                        *, n_rows, block_rows, chunk_rows):
    """One grid step: masked SSE over `block_rows` frames -> single (1, 1) partial."""
    block_start = pl.program_id(0) * block_rows
    n_chunks = block_rows // chunk_rows

    def body(c, acc):
        start = pl.multiple_of(c * chunk_rows, chunk_rows)
        rows = pl.ds(start, chunk_rows)

        # Row-validity mask for the ragged tail block (no wrapper-side padding; the
        # OOB rows of the VMEM block hold garbage and must be zeroed BEFORE squaring).
        row_idx = (block_start + start
                   + lax.broadcasted_iota(jnp.int32, (chunk_rows, 1), 0))
        valid = row_idx < n_rows                                        # (CR, 1)

        # Upcast to f32 inside the kernel (inputs may be bf16).
        pm = jnp.clip(pm_ref[rows, :].astype(jnp.float32), 0.0, 1.0)   # clamp(0, 1)
        noisy = noisy_ref[rows, :].astype(jnp.float32)
        clean = clean_ref[rows, :].astype(jnp.float32)

        diff = jnp.where(valid, pm * noisy - clean, 0.0)                # (CR, F)
        # Reduce over freq (lane) axis first, then apply the per-frame mask.
        per_frame = jnp.sum(diff * diff, axis=-1, keepdims=True)        # (CR, 1)
        m = jnp.where(valid, m_ref[rows, :], 0.0)                       # tail rows of mask may be garbage
        return acc + jnp.sum(per_frame * m, axis=(0, 1), keepdims=True)

    acc0 = jnp.zeros((1, 1), jnp.float32)
    out_ref[...] = lax.fori_loop(0, n_chunks, body, acc0)


def _vmem_capacity_bytes():
    try:
        return int(pltpu.get_tpu_info().vmem_capacity_bytes)
    except Exception:
        return 64 << 20            # conservative fallback: v7x per-TensorCore VMEM


def _choose_rows_per_block(n_rows, feat, itemsize):
    """Rows per block: multiple of 8 (and of the chunk size when larger than it),
    ~4 MiB per input block, capped by a generation-aware VMEM budget."""
    vmem_cap = _vmem_capacity_bytes()
    # 3 inputs x 2 pipeline buffers must fit with headroom for the mask, output and
    # in-kernel intermediates; ~48 MiB ceiling keeps v7x (64 MiB VMEM/TC) safe.
    budget = min(vmem_cap - (16 << 20), 48 << 20)
    per_input = max(8 * feat * itemsize, min(_TARGET_BLOCK_BYTES, budget // 8))
    rows = max(8, (per_input // max(1, feat * itemsize)) // 8 * 8)
    n_rounded = ((n_rows + 7) // 8) * 8
    rows = int(min(rows, n_rounded))
    if rows > _CHUNK_ROWS:
        rows = (rows // _CHUNK_ROWS) * _CHUNK_ROWS   # make the chunk size divide the block
    return rows


def filter_loss(predicted_mask, noisy_logstft, clean_logstft, mask=None,
                reduction: str = "mean", rows_per_block=None):
    B, T, F = predicted_mask.shape
    N = B * T

    # Frame-selection mask (PyTorch semantics: mask == 1 selects a whole frame).
    if mask is None:
        sel = jnp.ones((B, T), jnp.float32)
    else:
        sel = (mask == 1).astype(jnp.float32)

    itemsize = max(jnp.dtype(a.dtype).itemsize
                   for a in (predicted_mask, noisy_logstft, clean_logstft))
    if rows_per_block is None:
        tr = _choose_rows_per_block(N, F, itemsize)
    else:
        tr = int(rows_per_block)
        assert tr % 8 == 0, "rows_per_block must be a multiple of 8"
    cr = tr if tr <= _CHUNK_ROWS else _CHUNK_ROWS
    assert tr % cr == 0

    num_blocks = pl.cdiv(N, tr)

    # Flat 2-D views (free reshapes, no HBM copy) -- no padding of the spectrograms.
    pm2 = predicted_mask.reshape(N, F)
    no2 = noisy_logstft.reshape(N, F)
    cl2 = clean_logstft.reshape(N, F)
    m2 = sel.reshape(N, 1)

    spec_in = pl.BlockSpec((tr, F), lambda i: (i, 0))
    spec_m = pl.BlockSpec((tr, 1), lambda i: (i, 0))
    spec_o = pl.BlockSpec((1, 1), lambda i: (i, 0))

    # Explicit VMEM limit: double-buffered inputs + mask + slack for intermediates.
    block_bytes = sum(tr * F * jnp.dtype(a.dtype).itemsize for a in (pm2, no2, cl2))
    vmem_limit = 2 * block_bytes + 2 * tr * 4 + (8 << 20)
    vmem_limit = int(min(max(vmem_limit, 32 << 20),
                         _vmem_capacity_bytes() - (8 << 20)))

    kernel = functools.partial(_filter_loss_kernel,
                               n_rows=N, block_rows=tr, chunk_rows=cr)

    partials = pl.pallas_call(
        kernel,
        out_shape=jax.ShapeDtypeStruct((num_blocks, 1), jnp.float32),
        grid_spec=pltpu.PrefetchScalarGridSpec(
            num_scalar_prefetch=0,
            grid=(num_blocks,),
            in_specs=[spec_in, spec_in, spec_in, spec_m],
            out_specs=spec_o,
        ),
        compiler_params=pltpu.CompilerParams(
            # Independent blocks -> megacore sharding on v7x (no-op on v5e/v6e).
            # TODO(synk): confirm in a profile that both v7x TCs issue DMAs; switch to
            # pltpu.CORE_PARALLEL if the single axis does not split across cores.
            dimension_semantics=("parallel",),
            vmem_limit_bytes=vmem_limit),
    )(pm2, no2, cl2, m2)

    sse = jnp.sum(partials)
    if reduction == "mean":
        cnt = jnp.sum(sel) * jnp.float32(F)   # element count from mask, not in-kernel
        return sse / cnt                      # NaN for an all-zero mask (matches PyTorch)
    elif reduction == "sum":
        return sse
    else:
        # TODO(synk): reduction='none' in PyTorch returns the per-element losses of the
        # boolean selection (data-dependent shape); only 'mean'/'sum' supported here.
        raise ValueError(f"unsupported reduction: {reduction}")


def _reference_loss(predicted_mask, noisy, clean, mask, reduction="mean"):
    pm = jnp.clip(predicted_mask.astype(jnp.float32), 0.0, 1.0)
    den = pm * noisy.astype(jnp.float32)
    diff = den - clean.astype(jnp.float32)
    sel = jnp.broadcast_to(mask[..., None] == 1, den.shape)
    sq = jnp.where(sel, diff * diff, 0.0)
    if reduction == "mean":
        return jnp.sum(sq) / jnp.sum(sel)
    return jnp.sum(sq)


if __name__ == "__main__":
    B, T, F = 2, 8, 128   # batch, frames, freq-bins
    key = jax.random.PRNGKey(0)
    k1, k2, k3 = jax.random.split(key, 3)

    # predicted mask intentionally outside [0,1] to exercise the clamp
    predicted_mask = jax.random.uniform(k1, (B, T, F), jnp.float32, -0.2, 1.2)
    noisy_logstft = jax.random.normal(k2, (B, T, F), jnp.float32)
    clean_logstft = jax.random.normal(k3, (B, T, F), jnp.float32)

    # frame-validity mask: first example has 6 valid frames, second has all 8
    lengths = jnp.array([6, 8], jnp.int32)
    mask = (jnp.arange(T)[None, :] < lengths[:, None]).astype(jnp.int32)

    # ---- f32 inputs, mean reduction ----
    loss = jax.block_until_ready(
        filter_loss(predicted_mask, noisy_logstft, clean_logstft, mask, "mean"))
    print(f"[FilterLoss] MSE Loss: {float(loss):.4f}")
    ref = _reference_loss(predicted_mask, noisy_logstft, clean_logstft, mask, "mean")
    assert jnp.allclose(loss, ref, rtol=1e-5, atol=1e-6), (loss, ref)

    # ---- f32 inputs, sum reduction ----
    loss_sum = jax.block_until_ready(
        filter_loss(predicted_mask, noisy_logstft, clean_logstft, mask, "sum"))
    ref_sum = _reference_loss(predicted_mask, noisy_logstft, clean_logstft, mask, "sum")
    assert jnp.allclose(loss_sum, ref_sum, rtol=1e-5, atol=1e-5), (loss_sum, ref_sum)

    # ---- bf16 inputs: no wrapper upcast, kernel computes in f32 internally ----
    pm_bf = predicted_mask.astype(jnp.bfloat16)
    no_bf = noisy_logstft.astype(jnp.bfloat16)
    cl_bf = clean_logstft.astype(jnp.bfloat16)
    loss_bf = jax.block_until_ready(filter_loss(pm_bf, no_bf, cl_bf, mask, "mean"))
    ref_bf = _reference_loss(pm_bf, no_bf, cl_bf, mask, "mean")
    assert jnp.allclose(loss_bf, ref_bf, rtol=1e-4, atol=1e-5), (loss_bf, ref_bf)

    # ---- no mask path ----
    loss_nm = jax.block_until_ready(
        filter_loss(predicted_mask, noisy_logstft, clean_logstft, None, "mean"))
    ref_nm = jnp.mean((jnp.clip(predicted_mask, 0.0, 1.0) * noisy_logstft
                       - clean_logstft) ** 2)
    assert jnp.allclose(loss_nm, ref_nm, rtol=1e-5, atol=1e-6), (loss_nm, ref_nm)

    # ---- ragged tail: N=26 frames, forced small blocks -> multiple grid steps plus a
    #      partial tail block (exercises the in-kernel row masking, no padding) ----
    T2 = 13
    kk1, kk2, kk3 = jax.random.split(jax.random.PRNGKey(1), 3)
    pm_r = jax.random.uniform(kk1, (B, T2, F), jnp.float32, -0.2, 1.2)
    no_r = jax.random.normal(kk2, (B, T2, F), jnp.float32)
    cl_r = jax.random.normal(kk3, (B, T2, F), jnp.float32)
    mask_r = (jnp.arange(T2)[None, :] < jnp.array([9, 13], jnp.int32)[:, None]).astype(jnp.int32)
    loss_r = jax.block_until_ready(
        filter_loss(pm_r, no_r, cl_r, mask_r, "mean", rows_per_block=8))
    ref_r = _reference_loss(pm_r, no_r, cl_r, mask_r, "mean")
    assert jnp.allclose(loss_r, ref_r, rtol=1e-5, atol=1e-6), (loss_r, ref_r)

    print("KERNEL_OK")
</pallas_src>

<mosaic_0001>
module attributes {stable_mosaic.version = 11 : i64} {
  func.func @_filter_loss_kernel(%arg0: i32, %arg1: memref<16x128xf32, #tpu.memory_space<vmem>>, %arg2: memref<16x128xf32, #tpu.memory_space<vmem>>, %arg3: memref<16x128xf32, #tpu.memory_space<vmem>>, %arg4: memref<16x1xf32, #tpu.memory_space<vmem>>, %arg5: memref<1x1xf32, #tpu.memory_space<vmem>>) attributes {dimension_semantics = [#tpu.dimension_semantics<parallel>], iteration_bounds = array<i64: 1>, scalar_prefetch = 0 : i64, scratch_operands = 0 : i64, tpu.core_type = #tpu.core_type<tc>, window_params = [{transform_indices = @transform_0, window_bounds = array<i64: 16, 128>}, {transform_indices = @transform_1, window_bounds = array<i64: 16, 128>}, {transform_indices = @transform_2, window_bounds = array<i64: 16, 128>}, {transform_indices = @transform_3, window_bounds = array<i64: 16, 1>}, {transform_indices = @transform_4, window_bounds = array<i64: 1, 1>}]} {
    %c16_i32 = arith.constant 16 : i32
    %0 = arith.muli %arg0, %c16_i32 : i32
    %cst = arith.constant 0.000000e+00 : f32
    %1 = vector.broadcast %cst : f32 to vector<1x1xf32>
    %c0_i32 = arith.constant 0 : i32
    %c16_i32_0 = arith.constant 16 : i32
    %2 = arith.muli %c0_i32, %c16_i32_0 : i32
    %3 = tpu.assume_multiple %2, 16 : i32
    %4 = arith.addi %0, %3 : i32
    %5 = tpu.iota {dimensions = array<i32: 0>} : vector<16x1xi32>
    %6 = vector.broadcast %4 : i32 to vector<16x1xi32>
    %7 = arith.addi %6, %5 : vector<16x1xi32>
    %c16_i32_1 = arith.constant 16 : i32
    %8 = vector.broadcast %c16_i32_1 : i32 to vector<16x1xi32>
    %9 = arith.cmpi slt, %7, %8 : vector<16x1xi32>
    %10 = arith.index_cast %3 : i32 to index
    %c0 = arith.constant 0 : index
    %11 = vector.load %arg1[%10, %c0] : memref<16x128xf32, #tpu.memory_space<vmem>>, vector<16x128xf32>
    %cst_2 = arith.constant 0.000000e+00 : f32
    %cst_3 = arith.constant 1.000000e+00 : f32
    %12 = vector.broadcast %cst_2 : f32 to vector<16x128xf32>
    %13 = arith.maximumf %12, %11 : vector<16x128xf32>
    %14 = vector.broadcast %cst_3 : f32 to vector<16x128xf32>
    %15 = arith.minimumf %14, %13 : vector<16x128xf32>
    %16 = arith.index_cast %3 : i32 to index
    %c0_4 = arith.constant 0 : index
    %17 = vector.load %arg2[%16, %c0_4] : memref<16x128xf32, #tpu.memory_space<vmem>>, vector<16x128xf32>
    %18 = arith.index_cast %3 : i32 to index
    %c0_5 = arith.constant 0 : index
    %19 = vector.load %arg3[%18, %c0_5] : memref<16x128xf32, #tpu.memory_space<vmem>>, vector<16x128xf32>
    %20 = arith.mulf %15, %17 : vector<16x128xf32>
    %21 = arith.subf %20, %19 : vector<16x128xf32>
    %cst_6 = arith.constant 0.000000e+00 : f32
    %22 = vector.shape_cast %9 : vector<16x1xi1> to vector<16x1xi1>
    %23 = vector.broadcast %22 : vector<16x1xi1> to vector<16x128xi1>
    %24 = vector.broadcast %cst_6 : f32 to vector<16x128xf32>
    %25 = arith.select %23, %21, %24 : vector<16x128xi1>, vector<16x128xf32>
    %26 = arith.mulf %25, %25 : vector<16x128xf32>
    %cst_7 = arith.constant dense<0.000000e+00> : vector<16xf32>
    %27 = vector.multi_reduction <add>, %26, %cst_7 [1] : vector<16x128xf32> to vector<16xf32>
    %28 = vector.shape_cast %27 : vector<16xf32> to vector<16x1xf32>
    %29 = arith.index_cast %3 : i32 to index
    %c0_8 = arith.constant 0 : index
    %30 = vector.load %arg4[%29, %c0_8] : memref<16x1xf32, #tpu.memory_space<vmem>>, vector<16x1xf32>
    %cst_9 = arith.constant 0.000000e+00 : f32
    %31 = vector.broadcast %cst_9 : f32 to vector<16x1xf32>
    %32 = arith.select %9, %30, %31 : vector<16x1xi1>, vector<16x1xf32>
    %33 = arith.mulf %28, %32 : vector<16x1xf32>
    %34 = vector.shape_cast %33 : vector<16x1xf32> to vector<1x16x1xf32>
    %cst_10 = arith.constant dense<0.000000e+00> : vector<1xf32>
    %35 = vector.multi_reduction <add>, %34, %cst_10 [1, 2] : vector<1x16x1xf32> to vector<1xf32>
    %36 = vector.shape_cast %35 : vector<1xf32> to vector<1x1x1xf32>
    %37 = vector.extract %36[0, 0, 0] : f32 from vector<1x1x1xf32>
    %38 = vector.broadcast %37 : f32 to vector<1x1xf32>
    %39 = arith.addf %1, %38 : vector<1x1xf32>
    %c1_i32 = arith.constant 1 : i32
    %c0_11 = arith.constant 0 : index
    %c0_12 = arith.constant 0 : index
    %40 = vector.load %arg5[%c0_11, %c0_12] : memref<1x1xf32, #tpu.memory_space<vmem>>, vector<1x1xf32>
    tpu.vector_store %arg5[%c0_11, %c0_12], %39 {strides = array<i32>} : memref<1x1xf32, #tpu.memory_space<vmem>>, vector<1x1xf32>,
    return
  }
  func.func @transform_0(%arg0: i32) -> (i32, i32) {
    %c0_i32 = arith.constant 0 : i32
    %c0_i32_0 = arith.constant 0 : i32
    return %arg0, %c0_i32 : i32, i32
  }
  func.func @transform_1(%arg0: i32) -> (i32, i32) {
    %c0_i32 = arith.constant 0 : i32
    %c0_i32_0 = arith.constant 0 : i32
    return %arg0, %c0_i32 : i32, i32
  }
  func.func @transform_2(%arg0: i32) -> (i32, i32) {
    %c0_i32 = arith.constant 0 : i32
    %c0_i32_0 = arith.constant 0 : i32
    return %arg0, %c0_i32 : i32, i32
  }
  func.func @transform_3(%arg0: i32) -> (i32, i32) {
    %c0_i32 = arith.constant 0 : i32
    %c0_i32_0 = arith.constant 0 : i32
    return %arg0, %c0_i32 : i32, i32
  }
  func.func @transform_4(%arg0: i32) -> (i32, i32) {
    %c0_i32 = arith.constant 0 : i32
    %c0_i32_0 = arith.constant 0 : i32
    return %arg0, %c0_i32 : i32, i32
  }
}

</mosaic_0001>

<bundles_post_ra>
// kernel: tpu_custom_call.1
= control target key start
LH: loop header
LB: loop body
LE: loop exit
PB: predicated region body
PF: predicated region fallthrough
CT: control target
= control target key end

     0   :  { %9 = vsyncpa [#allocation3], 0  ;;  %s245_s0 = inlined_call_operand.vmem [shape: f32[16,128], index: 0, kind: input, shape index: {}]   ;;  %s246_s1 = inlined_call_operand.hbm [shape: f32[16,128], index: 1, kind: input, shape index: {}]   ;;  %s247_s2 = inlined_call_operand.hbm [shape: f32[16,128], index: 2, kind: input, shape index: {}]   ;;  %s248_s3 = inlined_call_operand.vmem [shape: f32[16,1], index: 3, kind: input, shape index: {}]   ;;  %s249_s4 = inlined_call_operand.hbm [shape: f32[1,1], index: 4, kind: output, shape index: {}]  }
   0x1   :  { %10 = vsyncpa [#allocation6], 0 }
   0x2   :  { %11 = vsyncpa [#allocation4], 0  ;;  %s194_s15 = smov [#allocation2]  }
   0x3   :  { %s19_s16 = sshll.u32 %s194_s15, 4  ;;  %s20_s16 = int_to_ptr.vmem [resolvable:$true] %s19_s16 }
   0x4   :  { %s136_s17 = scalar_lea.vmem %s20_s16, 256  ;;  %p141_p1 = scmp.lt.s32.totalorder %s20_s16, %s20_s16 }
   0x5   :  { %p137_p0 = scmp.ne.s32.totalorder %s20_s16, %s136_s17  ;;  %p142_p2 = scmp.lt.s32.totalorder %s136_s17, %s136_s17 }
   0x7   :  { %p143_p3 = por %p142_p2, %p141_p1 }
   0x9   :  { %p144_p4 = pnand %p143_p3, %p137_p0 }
   0xb   :  { %147 = shalt.err (!%p144_p4)
}
   0xc   :  { %s195_s18 = smov 128   ;;  %s196_s19 = smov 8  }
   0xd   :  { %25 = dma.hbm_to_vmem [thread:$0]  %s246_s1, 256, %s20_s16, [#allocation3], %s195_s18, %s195_s18, %s196_s19  }
   0xe   :  { %s197_s22 = smov [#allocation5]  }
   0xf   :  { %s31_s23 = sshll.u32 %s197_s22, 4  ;;  %s32_s23 = int_to_ptr.vmem [resolvable:$true] %s31_s23 }
  0x10   :  { %s156_s24 = scalar_lea.vmem %s32_s23, 256  ;;  %p161_p6 = scmp.lt.s32.totalorder %s32_s23, %s32_s23 }
  0x11   :  { %p157_p5 = scmp.ne.s32.totalorder %s32_s23, %s156_s24  ;;  %p162_p7 = scmp.lt.s32.totalorder %s156_s24, %s156_s24 }
  0x13   :  { %p163_p8 = por %p162_p7, %p161_p6 }
  0x15   :  { %p164_p9 = pnand %p163_p8, %p157_p5 }
  0x17   :  { %167 = shalt.err (!%p164_p9)
}
  0x18   :  { %37 = dma.hbm_to_vmem [thread:$0]  %s247_s2, 256, %s32_s23, [#allocation6], %s195_s18, %s195_s18, %s196_s19  }
  0x19   :  { %188 = dma.done.wait [#allocation3], 256  }
  0x1a   :  { %189 = vsyncadd [#allocation3], 4294967040 }
  0x1b   :  { %190 = dma.done.wait [#allocation6], 256  }
  0x1c   :  { %191 = vsyncadd [#allocation6], 4294967040  ;;  %v56_v0 = vld [vmem:[%s245_s0] sm:$0xff]  ;;  %v57_v2 = vld [vmem:[%s245_s0 + $0x8] sm:$0xff]  ;;  %vm88_vm0 = vcmask 7168   ;;  %s198_s6 = smov [#allocation7]  }
  0x1d   :  { %v58_v1 = vmax.f32 %v56_v0, 0.0  ;;  %v62_v3 = vld [vmem:[#allocation2] sm:$0xff]  ;;  %v59_v4 = vmax.f32 %v57_v2, 0.0  ;;  %v63_v6 = vld [vmem:[#allocation2 + $0x8] sm:$0xff]  ;;  %v64_v7 = vld [vmem:[#allocation5] sm:$0xff]  ;;  %s111_s7 = sshll.u32 %s198_s6, 4  ;;  %s112_s7 = int_to_ptr.vmem [resolvable:$true] %s111_s7 }
  0x1e   :  { %v65_v10 = vld [vmem:[#allocation5 + $0x8] sm:$0xff]  ;;  %v82_v16 = vld [vmem:[%s248_s3] sm:$0xff]  ;;  %v83_v18 = vld [vmem:[%s248_s3 + $0x8] sm:$0xff]  ;;  %vm103_vm1 = vcmask 0   ;;  %s168_s8 = scalar_lea.vmem %s112_s7, 16  ;;  %s172_s9 = scalar_lea.vmem %s112_s7, 32 }
  0x1f   :  { %v60_v5 = vmin.f32 %v58_v1, 1.0  ;;  %v61_v8 = vmin.f32 %v59_v4, 1.0  ;;  %p169_p10 = scmp.ne.s32.totalorder %s112_s7, %s168_s8  ;;  %p173_p11 = scmp.lt.s32.totalorder %s112_s7, %s112_s7 }
  0x20   :  { %p174_p12 = scmp.lt.s32.totalorder %s172_s9, %s168_s8 }
  0x21   :  { %v66_v9 = vmul.f32 %v62_v3, %v60_v5  ;;  %v67_v11 = vmul.f32 %v63_v6, %v61_v8 }
  0x22   :  { %p175_p13 = por %p174_p12, %p173_p11 }
  0x23   :  { %v68_v12 = vsub.f32 %v66_v9, %v64_v7  ;;  %v69_v13 = vsub.f32 %v67_v11, %v65_v10 }
  0x24   :  { %p176_p0 = pnand %p175_p13, %p169_p10 }
  0x25   :  { %v76_v14 = vmul.f32 %v68_v12, %v68_v12  ;;  %v77_v15 = vmul.f32 %v69_v13, %v69_v13 }
  0x27   :  { %78 = vadd.xlane.f32.xlu0 %v76_v14 }
  0x2b   :  { %80 = vadd.xlane.f32.xlu0 %v77_v15 }
  0xb0   :  { %v79_v17 = vpop.xlane.xlu0 %78 }
  0xb1   :  { %v86_v19 = vmul.f32 %v82_v16, %v79_v17 }
  0xb3   :  { %v89_v22 = vsel %vm88_vm0, %v86_v19, 0.0 }
  0xb4   :  { %v81_v20 = vpop.xlane.xlu0 %80 }
  0xb5   :  { %v87_v21 = vmul.f32 %v83_v18, %v81_v20 }
  0xb7   :  { %v90_v23 = vsel %vm88_vm0, %v87_v21, 0.0 }
  0xb8   :  { %v91_v24 = vadd.f32 %v90_v23, %v89_v22 }
  0xba   :  { %92 = vadd.xlane.f32.xlu1 %v91_v24 }
 0x143   :  { %v93_v25 = vpop.xlane.xlu1 %92 }
 0x144   :  { %v94_v26 = vrot.slane %v93_v25, 4 }
 0x146   :  { %v95_v27 = vadd.f32 %v94_v26, %v93_v25 }
 0x148   :  { %v96_v28 = vrot.slane %v95_v27, 2 }
 0x14a   :  { %v97_v29 = vadd.f32 %v96_v28, %v95_v27 }
 0x14c   :  { %v98_v30 = vrot.slane %v97_v29, 1 }
 0x14e   :  { %v99_v31 = vadd.f32 %v98_v30, %v97_v29 }
 0x150   :  { %121 = vpush %v99_v31 }
 0x181   :  { %s122_s3 = spop %121 }
 0x182   :  { %v101_v32 = vstv %s122_s3 }
 0x183   :  { %104 = vst.msk [vmem:[#allocation7] sm:$0x1] %vm103_vm1, %v101_v32 }
 0x184   :  { %179 = shalt.err (!%p176_p0)
}
 0x185   :  { %114 = dma.vmem_to_hbm [thread:$0]  %s112_s7, 16, %s249_s4, [#allocation4]  }
 0x186   :  { %192 = dma.done.wait [#allocation4], 16  }
 0x187   :  { %193 = vsyncadd [#allocation4], 4294967280 }
 0x188   :  { %118 = vsyncpa [#allocation3], 1 }
 0x189   :  { %119 = vsyncpa [#allocation6], 1 }
 0x18a   :  { %120 = vsyncpa [#allocation4], 1 }

</bundles_post_ra>
